<compile_context>
chip_gen: v5e
topology: v5e:2x2
jax: 0.10.0
libtpu: 0.0.40
codegen_flags: <defaults>
</compile_context>

<pallas_src>
import functools

import jax
import jax.numpy as jnp
from jax.experimental import pallas as pl
from jax.experimental.pallas import tpu as pltpu

BN_EPS = 1e-5
COMPUTE_DT = jnp.bfloat16   # MXU operand dtype; accumulation / BN math stays float32.

# MXU-native tap grouping for the F-wide convs (contraction depth K = TAP_GROUP * F):
#   v6e / v7x: 256-deep MXU -> TAP_GROUP = 2 (K = 256 when n_features = 128)
#   v5e:       128-deep MXU -> set TAP_GROUP = 1 (K = 128)
TAP_GROUP = 2


# ---------------------------------------------------------------------------
# In-kernel building blocks
# ---------------------------------------------------------------------------
def _fill_padded(hpad_ref, h, pad_l, pad_r):
    """Write the activation h (NB, L, C) once into a zero-padded VMEM scratch."""
    NB, L, C = h.shape
    if pad_l:
        hpad_ref[:, :pad_l, :] = jnp.zeros((NB, pad_l, C), h.dtype)
    hpad_ref[:, pad_l:pad_l + L, :] = h
    if pad_r:
        hpad_ref[:, pad_l + L:, :] = jnp.zeros((NB, pad_r, C), h.dtype)


def _conv_from_padded(hpad_ref, w_ref, *, k, L, group):
    """'same' stride-1 Conv1d from a pre-padded scratch, accumulating tap groups.

    hpad_ref: (NB, L + k - 1, C) bf16 scratch (already filled)
    w_ref:    (k * C, Cout) bf16 weight ref (row index = tap * C + cin), VMEM-resident
    Returns (NB * L, Cout) float32.  Conv bias intentionally omitted: it is cancelled
    exactly by the training-mode BatchNorm mean subtraction that always follows.
    """
    NB, _, C = hpad_ref.shape
    acc = None
    t = 0
    while t < k:
        g = min(group, k - t)
        if g == 1:
            cols = hpad_ref[:, t:t + L, :]
        else:
            cols = jnp.concatenate(
                [hpad_ref[:, t + j:t + j + L, :] for j in range(g)], axis=-1)
        cols = cols.reshape(NB * L, g * C)            # free: L is a multiple of 8
        part = jnp.dot(cols, w_ref[t * C:(t + g) * C, :],
                       preferred_element_type=jnp.float32)
        acc = part if acc is None else acc + part
        t += g
    return acc


def _partial_stats(a2):
    """Per-tile per-channel (sum, sum of squares) of an (M, C) float32 activation."""
    return jnp.concatenate(
        [jnp.sum(a2, axis=0, keepdims=True),
         jnp.sum(a2 * a2, axis=0, keepdims=True)], axis=0)


def _stage_x_kernel(x_ref, wx_ref, ws_ref,
                    ax_ref, as_ref, sx_ref, ss_ref, xpad_ref, *, k):
    """conv_x (k=8, im2col) + shortcut conv (k=1) + BN partial stats for both."""
    NB, L, Cin = x_ref.shape
    F = ax_ref.shape[-1]
    pad_l = (k - 1) // 2
    pad_r = (k - 1) - pad_l

    x = x_ref[...]
    _fill_padded(xpad_ref, x, pad_l, pad_r)
    # k=8 conv: full im2col (K = k*Cin, Cin small) -> a single MXU matmul.
    ax = _conv_from_padded(xpad_ref, wx_ref, k=k, L=L, group=k)
    # k=1 shortcut conv on the same resident input tile (no second read of x).
    a_s = jnp.dot(x.reshape(NB * L, Cin), ws_ref[...],
                  preferred_element_type=jnp.float32)

    ax_ref[...] = ax.reshape(NB, L, F)
    as_ref[...] = a_s.reshape(NB, L, F)
    sx_ref[...] = _partial_stats(ax).reshape(1, 2, F)
    ss_ref[...] = _partial_stats(a_s).reshape(1, 2, F)


def _stage_conv_kernel(scale_ref, shift_ref, a_prev_ref, w_ref,
                       a_out_ref, stats_ref, hpad_ref, *, k, group):
    """normalize+ReLU(previous stage) fused with this stage's conv + BN partial stats."""
    NB, L, _ = a_prev_ref.shape
    F = a_out_ref.shape[-1]
    pad_l = (k - 1) // 2
    pad_r = (k - 1) - pad_l

    # Folded BN (scale/shift precomputed from the global batch stats) + ReLU, produced
    # directly in bf16 (the conv operand dtype) and written once into the padded scratch.
    h = jnp.maximum(a_prev_ref[...] * scale_ref[...] + shift_ref[...], 0.0)
    _fill_padded(hpad_ref, h.astype(COMPUTE_DT), pad_l, pad_r)

    a = _conv_from_padded(hpad_ref, w_ref, k=k, L=L, group=group)
    a_out_ref[...] = a.reshape(NB, L, F)
    stats_ref[...] = _partial_stats(a).reshape(1, 2, F)


def _combine_kernel(scz_ref, shz_ref, scs_ref, shs_ref, az_ref, as_ref, o_ref):
    """relu(bn_z(a_z)) + bn_s(a_s), then output ReLU."""
    c_z = jnp.maximum(az_ref[...] * scz_ref[...] + shz_ref[...], 0.0)
    s = as_ref[...] * scs_ref[...] + shs_ref[...]
    o_ref[...] = jnp.maximum(s + c_z, 0.0)


# ---------------------------------------------------------------------------
# Host-side glue: stats folding, VMEM budgeting, tile selection
# ---------------------------------------------------------------------------
def _fold_bn(stats, gamma, beta, count):
    """Fold global batch stats + affine params into per-channel (scale, shift)."""
    tot = jnp.sum(stats, axis=0)                               # (2, F)
    mean = tot[0] / count
    var = jnp.maximum(tot[1] / count - mean * mean, 0.0)       # clamp single-pass var
    scale = gamma.reshape(-1) * jax.lax.rsqrt(var + BN_EPS)
    shift = beta.reshape(-1) - mean * scale
    return scale.reshape(1, -1), shift.reshape(1, -1)


def _vmem_budget_bytes():
    """~85% of physical per-core VMEM (~108 MiB on v5e/v6e, ~54 MiB on v7x)."""
    cap = 64 * 1024 * 1024
    try:
        cap = int(getattr(pltpu.get_tpu_info(), "vmem_capacity_bytes", cap))
    except Exception:
        pass
    return int(cap * 0.85)


def _stage_tile_bytes(nb, L, cin, cout, k, group):
    """Per-tile working set: double-buffered in/out tiles + scratch + resident weights."""
    rows = nb * L
    return (2 * rows * cin * 4                    # input tile (f32 pre-BN upper bound), 2x buffered
            + 2 * rows * cout * 4                 # output pre-BN tile, 2x buffered
            + nb * (L + k - 1) * cin * 2          # padded bf16 scratch
            + rows * min(group, k) * cin * 2      # tap-group slab temp
            + rows * cout * 4                     # f32 accumulator value
            + k * cin * cout * 2                  # resident bf16 weights
            + 6 * cout * 4)                       # scale/shift + stats blocks


def _pick_batch_tile(N, L, cin, F, budget):
    """Largest divisor of N whose worst-stage tile fits ~60% of the scoped-VMEM budget."""
    best = 1
    for nb in range(1, N + 1):
        if N % nb:
            continue
        worst = max(
            _stage_tile_bytes(nb, L, cin, F, 8, 8) + _stage_tile_bytes(nb, L, cin, F, 1, 1),
            _stage_tile_bytes(nb, L, F, F, 5, TAP_GROUP),
            _stage_tile_bytes(nb, L, F, F, 3, TAP_GROUP),
            3 * 2 * nb * L * F * 4,               # combine call: three f32 tiles, 2x buffered
        )
        if worst <= 0.6 * budget:
            best = nb
    return best


# ---------------------------------------------------------------------------
# Wrapper
# ---------------------------------------------------------------------------
def res_block(x_nlc, params, *, batch_tile=None):
    """Fused ResBlock forward (PyTorch training-mode BatchNorm semantics).

    x_nlc: (N, L, Cin) channels-last float32 (the PyTorch NCL input transposed once at
           the model boundary; NLC is kept end-to-end to avoid per-block transposes).
    Returns (N, L, n_features) float32.
    """
    N, L, Cin = x_nlc.shape
    F = params["wx"].shape[-1]
    count = float(N * L)

    budget = _vmem_budget_bytes()
    NB = batch_tile if batch_tile is not None else _pick_batch_tile(N, L, Cin, F, budget)
    if N % NB:
        raise ValueError(f"batch_tile={NB} must divide N={N}")
    T = N // NB
    cp = pltpu.CompilerParams(dimension_semantics=("parallel",),
                              vmem_limit_bytes=budget)

    def prep_w(w):  # (k, Cin, Cout) -> (k*Cin, Cout), MXU operand dtype
        k, ci, co = w.shape
        return w.reshape(k * ci, co).astype(COMPUTE_DT)

    wx, wy, wz, ws = (prep_w(params[n]) for n in ("wx", "wy", "wz", "ws"))
    x_bf = x_nlc.astype(COMPUTE_DT)

    # Block specs: activations get a new block per grid step; weights / per-channel
    # vectors use a constant index_map so they are DMA'd once and stay resident.
    def act_spec(c):
        return pl.BlockSpec((NB, L, c), lambda i: (i, 0, 0))

    def const_spec(shape):
        return pl.BlockSpec(shape, lambda i: (0,) * len(shape))

    stats_spec = pl.BlockSpec((1, 2, F), lambda i: (i, 0, 0))
    act_shape = jax.ShapeDtypeStruct((N, L, F), jnp.float32)
    stats_shape = jax.ShapeDtypeStruct((T, 2, F), jnp.float32)

    # ---- call 1: conv_x (k=8) + shortcut conv (k=1) + BN partial stats ------------
    a_x, a_s, st_x, st_s = pl.pallas_call(
        functools.partial(_stage_x_kernel, k=8),
        grid=(T,),
        in_specs=[act_spec(Cin), const_spec(wx.shape), const_spec(ws.shape)],
        out_specs=(act_spec(F), act_spec(F), stats_spec, stats_spec),
        out_shape=(act_shape, act_shape, stats_shape, stats_shape),
        scratch_shapes=[pltpu.VMEM((NB, L + 7, Cin), COMPUTE_DT)],
        compiler_params=cp,
        cost_estimate=pl.CostEstimate(
            flops=2 * N * L * F * (8 * Cin + Cin) + 6 * N * L * F,
            transcendentals=0,
            bytes_accessed=N * L * Cin * 2 + 2 * N * L * F * 4 + 9 * Cin * F * 2),
    )(x_bf, wx, ws)

    scale_x, shift_x = _fold_bn(st_x, params["gx"], params["betax"], count)

    # ---- calls 2/3: normalize+ReLU(stage i) fused with conv(stage i+1) + stats ----
    def stage_call(scale, shift, a_prev, w, k):
        return pl.pallas_call(
            functools.partial(_stage_conv_kernel, k=k, group=TAP_GROUP),
            grid=(T,),
            in_specs=[const_spec((1, F)), const_spec((1, F)),
                      act_spec(F), const_spec(w.shape)],
            out_specs=(act_spec(F), stats_spec),
            out_shape=(act_shape, stats_shape),
            scratch_shapes=[pltpu.VMEM((NB, L + k - 1, F), COMPUTE_DT)],
            compiler_params=cp,
            cost_estimate=pl.CostEstimate(
                flops=2 * N * L * F * (k * F) + 6 * N * L * F,
                transcendentals=0,
                bytes_accessed=2 * N * L * F * 4 + k * F * F * 2),
        )(scale, shift, a_prev, w)

    a_y, st_y = stage_call(scale_x, shift_x, a_x, wy, 5)
    scale_y, shift_y = _fold_bn(st_y, params["gy"], params["betay"], count)

    a_z, st_z = stage_call(scale_y, shift_y, a_y, wz, 3)
    scale_z, shift_z = _fold_bn(st_z, params["gz"], params["betaz"], count)
    scale_s, shift_s = _fold_bn(st_s, params["gs"], params["betas"], count)

    # ---- call 4: relu(bn_z) + bn_s + add + output ReLU ----------------------------
    out = pl.pallas_call(
        _combine_kernel,
        grid=(T,),
        in_specs=[const_spec((1, F))] * 4 + [act_spec(F), act_spec(F)],
        out_specs=act_spec(F),
        out_shape=act_shape,
        compiler_params=cp,
        cost_estimate=pl.CostEstimate(flops=6 * N * L * F, transcendentals=0,
                                      bytes_accessed=3 * N * L * F * 4),
    )(scale_z, shift_z, scale_s, shift_s, a_z, a_s)

    return out


# ---------------------------------------------------------------------------
# Parameters + pure-JAX reference (mirrors the PyTorch module literally)
# ---------------------------------------------------------------------------
def init_params(key, inp, n_features):
    """Deterministic synthetic parameters. Conv weights stored as (k, Cin, Cout)."""
    ks = iter(jax.random.split(key, 24))

    def conv(ksize, cin, cout):
        bound = 1.0 / (cin * ksize) ** 0.5
        w = jax.random.uniform(next(ks), (ksize, cin, cout), jnp.float32, -bound, bound)
        b = jax.random.uniform(next(ks), (1, cout), jnp.float32, -bound, bound)
        return w, b

    def bn(cout):
        g = 1.0 + 0.1 * jax.random.normal(next(ks), (1, cout), jnp.float32)
        b = 0.1 * jax.random.normal(next(ks), (1, cout), jnp.float32)
        return g, b

    p = {}
    p["wx"], p["bx"] = conv(8, inp, n_features)
    p["gx"], p["betax"] = bn(n_features)
    p["wy"], p["by"] = conv(5, n_features, n_features)
    p["gy"], p["betay"] = bn(n_features)
    p["wz"], p["bz"] = conv(3, n_features, n_features)
    p["gz"], p["betaz"] = bn(n_features)
    p["ws"], p["bs"] = conv(1, inp, n_features)
    p["gs"], p["betas"] = bn(n_features)
    return p


def res_block_ref(x_nlc, params):
    """Plain-JAX reference: conv WITH bias, two-pass training-mode BN; conv matmul
    operands cast to bfloat16 with f32 accumulation (the kernel's precision policy)."""
    def conv(x3, w, b, k):
        N, L, _ = x3.shape
        pad_l = (k - 1) // 2
        pad_r = (k - 1) - pad_l
        xp = jnp.pad(x3, ((0, 0), (pad_l, pad_r), (0, 0)))
        out = jnp.zeros((N, L, w.shape[-1]), jnp.float32)
        for t in range(k):
            out = out + jnp.einsum(
                "nlc,cf->nlf",
                xp[:, t:t + L, :].astype(COMPUTE_DT),
                w[t].astype(COMPUTE_DT),
                preferred_element_type=jnp.float32)
        return out + b.reshape(1, 1, -1)

    def bn(x3, g, beta):
        mean = jnp.mean(x3, axis=(0, 1), keepdims=True)
        var = jnp.mean((x3 - mean) ** 2, axis=(0, 1), keepdims=True)
        return ((x3 - mean) * jax.lax.rsqrt(var + BN_EPS) * g.reshape(1, 1, -1)
                + beta.reshape(1, 1, -1))

    c = jax.nn.relu(bn(conv(x_nlc, params["wx"], params["bx"], 8), params["gx"], params["betax"]))
    c = jax.nn.relu(bn(conv(c, params["wy"], params["by"], 5), params["gy"], params["betay"]))
    c = jax.nn.relu(bn(conv(c, params["wz"], params["bz"], 3), params["gz"], params["betaz"]))
    s = bn(conv(x_nlc, params["ws"], params["bs"], 1), params["gs"], params["betas"])
    return jax.nn.relu(s + c)


if __name__ == "__main__":
    key = jax.random.PRNGKey(0)
    k_x, k_p = jax.random.split(key)

    # Small demo shapes. n_features = 128 keeps the channel (lane) dim dense; L = 16
    # (multiple of 8) keeps in-kernel reshapes free; batch_tile = 2 gives a grid of 4
    # "parallel" tiles and exercises the cross-tile two-pass BatchNorm path.
    N, inp, n_features, L = 8, 4, 128, 16
    x_nlc = jax.random.normal(k_x, (N, L, inp), jnp.float32)   # channels-last input
    params = init_params(k_p, inp, n_features)

    out = jax.block_until_ready(res_block(x_nlc, params, batch_tile=2))
    assert out.shape == (N, L, n_features)

    ref = jax.block_until_ready(res_block_ref(x_nlc, params))
    assert jnp.allclose(out, ref, rtol=2e-2, atol=2e-2), float(jnp.max(jnp.abs(out - ref)))

    print("KERNEL_OK")
</pallas_src>

<mosaic_0001>
module attributes {stable_mosaic.version = 11 : i64} {
  func.func @_stage_x_kernel(%arg0: i32, %arg1: memref<2x16x4xbf16, #tpu.memory_space<vmem>>, %arg2: memref<32x128xbf16, #tpu.memory_space<vmem>>, %arg3: memref<4x128xbf16, #tpu.memory_space<vmem>>, %arg4: memref<2x16x128xf32, #tpu.memory_space<vmem>>, %arg5: memref<2x16x128xf32, #tpu.memory_space<vmem>>, %arg6: memref<1x2x128xf32, #tpu.memory_space<vmem>>, %arg7: memref<1x2x128xf32, #tpu.memory_space<vmem>>, %arg8: memref<2x23x4xbf16, #tpu.memory_space<vmem>>) attributes {dimension_semantics = [#tpu.dimension_semantics<parallel>], iteration_bounds = array<i64: 4>, scalar_prefetch = 0 : i64, scratch_operands = 1 : i64, tpu.core_type = #tpu.core_type<tc>, window_params = [{transform_indices = @transform_0, window_bounds = array<i64: 2, 16, 4>}, {pipeline_mode = #tpu.pipeline_mode<synchronous>, transform_indices = @transform_1, window_bounds = array<i64: 32, 128>}, {pipeline_mode = #tpu.pipeline_mode<synchronous>, transform_indices = @transform_2, window_bounds = array<i64: 4, 128>}, {transform_indices = @transform_3, window_bounds = array<i64: 2, 16, 128>}, {transform_indices = @transform_4, window_bounds = array<i64: 2, 16, 128>}, {transform_indices = @transform_5, window_bounds = array<i64: 1, 2, 128>}, {transform_indices = @transform_6, window_bounds = array<i64: 1, 2, 128>}]} {
    %c0 = arith.constant 0 : index
    %c0_0 = arith.constant 0 : index
    %c0_1 = arith.constant 0 : index
    %0 = vector.load %arg1[%c0, %c0_0, %c0_1] : memref<2x16x4xbf16, #tpu.memory_space<vmem>>, vector<2x16x4xbf16>
    %cst = arith.constant 0.000000e+00 : bf16
    %1 = vector.broadcast %cst : bf16 to vector<2x3x4xbf16>
    %c0_2 = arith.constant 0 : index
    %c0_3 = arith.constant 0 : index
    %c0_4 = arith.constant 0 : index
    %2 = vector.load %arg8[%c0_2, %c0_3, %c0_4] : memref<2x23x4xbf16, #tpu.memory_space<vmem>>, vector<2x3x4xbf16>
    tpu.vector_store %arg8[%c0_2, %c0_3, %c0_4], %1 {strides = array<i32>} : memref<2x23x4xbf16, #tpu.memory_space<vmem>>, vector<2x3x4xbf16>,
    %c0_5 = arith.constant 0 : index
    %c3 = arith.constant 3 : index
    %c0_6 = arith.constant 0 : index
    %3 = vector.load %arg8[%c0_5, %c3, %c0_6] : memref<2x23x4xbf16, #tpu.memory_space<vmem>>, vector<2x16x4xbf16>
    tpu.vector_store %arg8[%c0_5, %c3, %c0_6], %0 {strides = array<i32>} : memref<2x23x4xbf16, #tpu.memory_space<vmem>>, vector<2x16x4xbf16>,
    %cst_7 = arith.constant 0.000000e+00 : bf16
    %4 = vector.broadcast %cst_7 : bf16 to vector<2x4x4xbf16>
    %c0_8 = arith.constant 0 : index
    %c19 = arith.constant 19 : index
    %c0_9 = arith.constant 0 : index
    %5 = vector.load %arg8[%c0_8, %c19, %c0_9] : memref<2x23x4xbf16, #tpu.memory_space<vmem>>, vector<2x4x4xbf16>
    tpu.vector_store %arg8[%c0_8, %c19, %c0_9], %4 {strides = array<i32>} : memref<2x23x4xbf16, #tpu.memory_space<vmem>>, vector<2x4x4xbf16>,
    %c0_10 = arith.constant 0 : index
    %c0_11 = arith.constant 0 : index
    %c0_12 = arith.constant 0 : index
    %6 = vector.load %arg8[%c0_10, %c0_11, %c0_12] : memref<2x23x4xbf16, #tpu.memory_space<vmem>>, vector<2x16x4xbf16>
    %c0_13 = arith.constant 0 : index
    %c1 = arith.constant 1 : index
    %c0_14 = arith.constant 0 : index
    %7 = vector.load %arg8[%c0_13, %c1, %c0_14] : memref<2x23x4xbf16, #tpu.memory_space<vmem>>, vector<2x16x4xbf16>
    %c0_15 = arith.constant 0 : index
    %c2 = arith.constant 2 : index
    %c0_16 = arith.constant 0 : index
    %8 = vector.load %arg8[%c0_15, %c2, %c0_16] : memref<2x23x4xbf16, #tpu.memory_space<vmem>>, vector<2x16x4xbf16>
    %c0_17 = arith.constant 0 : index
    %c3_18 = arith.constant 3 : index
    %c0_19 = arith.constant 0 : index
    %9 = vector.load %arg8[%c0_17, %c3_18, %c0_19] : memref<2x23x4xbf16, #tpu.memory_space<vmem>>, vector<2x16x4xbf16>
    %c0_20 = arith.constant 0 : index
    %c4 = arith.constant 4 : index
    %c0_21 = arith.constant 0 : index
    %10 = vector.load %arg8[%c0_20, %c4, %c0_21] : memref<2x23x4xbf16, #tpu.memory_space<vmem>>, vector<2x16x4xbf16>
    %c0_22 = arith.constant 0 : index
    %c5 = arith.constant 5 : index
    %c0_23 = arith.constant 0 : index
    %11 = vector.load %arg8[%c0_22, %c5, %c0_23] : memref<2x23x4xbf16, #tpu.memory_space<vmem>>, vector<2x16x4xbf16>
    %c0_24 = arith.constant 0 : index
    %c6 = arith.constant 6 : index
    %c0_25 = arith.constant 0 : index
    %12 = vector.load %arg8[%c0_24, %c6, %c0_25] : memref<2x23x4xbf16, #tpu.memory_space<vmem>>, vector<2x16x4xbf16>
    %c0_26 = arith.constant 0 : index
    %c7 = arith.constant 7 : index
    %c0_27 = arith.constant 0 : index
    %13 = vector.load %arg8[%c0_26, %c7, %c0_27] : memref<2x23x4xbf16, #tpu.memory_space<vmem>>, vector<2x16x4xbf16>
    %14 = tpu.concatenate %6, %7, %8, %9, %10, %11, %12, %13 in 2 : vector<2x16x4xbf16>, vector<2x16x4xbf16>, vector<2x16x4xbf16>, vector<2x16x4xbf16>, vector<2x16x4xbf16>, vector<2x16x4xbf16>, vector<2x16x4xbf16>, vector<2x16x4xbf16> -> vector<2x16x32xbf16>
    %15 = vector.shape_cast %14 : vector<2x16x32xbf16> to vector<32x32xbf16>
    %c0_28 = arith.constant 0 : index
    %c0_29 = arith.constant 0 : index
    %16 = vector.load %arg2[%c0_28, %c0_29] : memref<32x128xbf16, #tpu.memory_space<vmem>>, vector<32x128xbf16>
    %cst_30 = arith.constant dense<0.000000e+00> : vector<32x128xf32>
    %17 = tpu.matmul %15, %16, %cst_30 {dimension_numbers = #tpu.dot_dimension_numbers<[1], [0], [0], [1], [0, 0, 1, 1], [], []>} : vector<32x32xbf16>, vector<32x128xbf16>, vector<32x128xf32> -> vector<32x128xf32>
    %18 = vector.shape_cast %0 : vector<2x16x4xbf16> to vector<32x4xbf16>
    %c0_31 = arith.constant 0 : index
    %c0_32 = arith.constant 0 : index
    %19 = vector.load %arg3[%c0_31, %c0_32] : memref<4x128xbf16, #tpu.memory_space<vmem>>, vector<4x128xbf16>
    %cst_33 = arith.constant dense<0.000000e+00> : vector<32x128xf32>
    %20 = tpu.matmul %18, %19, %cst_33 {dimension_numbers = #tpu.dot_dimension_numbers<[1], [0], [0], [1], [0, 0, 1, 1], [], []>} : vector<32x4xbf16>, vector<4x128xbf16>, vector<32x128xf32> -> vector<32x128xf32>
    %21 = vector.shape_cast %17 : vector<32x128xf32> to vector<2x16x128xf32>
    %c0_34 = arith.constant 0 : index
    %c0_35 = arith.constant 0 : index
    %c0_36 = arith.constant 0 : index
    %22 = vector.load %arg4[%c0_34, %c0_35, %c0_36] : memref<2x16x128xf32, #tpu.memory_space<vmem>>, vector<2x16x128xf32>
    tpu.vector_store %arg4[%c0_34, %c0_35, %c0_36], %21 {strides = array<i32>} : memref<2x16x128xf32, #tpu.memory_space<vmem>>, vector<2x16x128xf32>,
    %23 = vector.shape_cast %20 : vector<32x128xf32> to vector<2x16x128xf32>
    %c0_37 = arith.constant 0 : index
    %c0_38 = arith.constant 0 : index
    %c0_39 = arith.constant 0 : index
    %24 = vector.load %arg5[%c0_37, %c0_38, %c0_39] : memref<2x16x128xf32, #tpu.memory_space<vmem>>, vector<2x16x128xf32>
    tpu.vector_store %arg5[%c0_37, %c0_38, %c0_39], %23 {strides = array<i32>} : memref<2x16x128xf32, #tpu.memory_space<vmem>>, vector<2x16x128xf32>,
    %cst_40 = arith.constant dense<0.000000e+00> : vector<128xf32>
    %25 = vector.multi_reduction <add>, %17, %cst_40 [0] : vector<32x128xf32> to vector<128xf32>
    %26 = vector.shape_cast %25 : vector<128xf32> to vector<1x128xf32>
    %27 = arith.mulf %17, %17 : vector<32x128xf32>
    %cst_41 = arith.constant dense<0.000000e+00> : vector<128xf32>
    %28 = vector.multi_reduction <add>, %27, %cst_41 [0] : vector<32x128xf32> to vector<128xf32>
    %29 = vector.shape_cast %28 : vector<128xf32> to vector<1x128xf32>
    %30 = tpu.concatenate %26, %29 in 0 : vector<1x128xf32>, vector<1x128xf32> -> vector<2x128xf32>
    %31 = vector.shape_cast %30 : vector<2x128xf32> to vector<1x2x128xf32>
    %c0_42 = arith.constant 0 : index
    %c0_43 = arith.constant 0 : index
    %c0_44 = arith.constant 0 : index
    %32 = vector.load %arg6[%c0_42, %c0_43, %c0_44] : memref<1x2x128xf32, #tpu.memory_space<vmem>>, vector<1x2x128xf32>
    tpu.vector_store %arg6[%c0_42, %c0_43, %c0_44], %31 {strides = array<i32>} : memref<1x2x128xf32, #tpu.memory_space<vmem>>, vector<1x2x128xf32>,
    %cst_45 = arith.constant dense<0.000000e+00> : vector<128xf32>
    %33 = vector.multi_reduction <add>, %20, %cst_45 [0] : vector<32x128xf32> to vector<128xf32>
    %34 = vector.shape_cast %33 : vector<128xf32> to vector<1x128xf32>
    %35 = arith.mulf %20, %20 : vector<32x128xf32>
    %cst_46 = arith.constant dense<0.000000e+00> : vector<128xf32>
    %36 = vector.multi_reduction <add>, %35, %cst_46 [0] : vector<32x128xf32> to vector<128xf32>
    %37 = vector.shape_cast %36 : vector<128xf32> to vector<1x128xf32>
    %38 = tpu.concatenate %34, %37 in 0 : vector<1x128xf32>, vector<1x128xf32> -> vector<2x128xf32>
    %39 = vector.shape_cast %38 : vector<2x128xf32> to vector<1x2x128xf32>
    %c0_47 = arith.constant 0 : index
    %c0_48 = arith.constant 0 : index
    %c0_49 = arith.constant 0 : index
    %40 = vector.load %arg7[%c0_47, %c0_48, %c0_49] : memref<1x2x128xf32, #tpu.memory_space<vmem>>, vector<1x2x128xf32>
    tpu.vector_store %arg7[%c0_47, %c0_48, %c0_49], %39 {strides = array<i32>} : memref<1x2x128xf32, #tpu.memory_space<vmem>>, vector<1x2x128xf32>,
    return
  }
  func.func @transform_0(%arg0: i32) -> (i32, i32, i32) {
    %c0_i32 = arith.constant 0 : i32
    %c0_i32_0 = arith.constant 0 : i32
    %c0_i32_1 = arith.constant 0 : i32
    return %arg0, %c0_i32, %c0_i32_0 : i32, i32, i32
  }
  func.func @transform_1(%arg0: i32) -> (i32, i32) {
    %c0_i32 = arith.constant 0 : i32
    %c0_i32_0 = arith.constant 0 : i32
    %c0_i32_1 = arith.constant 0 : i32
    return %c0_i32, %c0_i32_0 : i32, i32
  }
  func.func @transform_2(%arg0: i32) -> (i32, i32) {
    %c0_i32 = arith.constant 0 : i32
    %c0_i32_0 = arith.constant 0 : i32
    %c0_i32_1 = arith.constant 0 : i32
    return %c0_i32, %c0_i32_0 : i32, i32
  }
  func.func @transform_3(%arg0: i32) -> (i32, i32, i32) {
    %c0_i32 = arith.constant 0 : i32
    %c0_i32_0 = arith.constant 0 : i32
    %c0_i32_1 = arith.constant 0 : i32
    return %arg0, %c0_i32, %c0_i32_0 : i32, i32, i32
  }
  func.func @transform_4(%arg0: i32) -> (i32, i32, i32) {
    %c0_i32 = arith.constant 0 : i32
    %c0_i32_0 = arith.constant 0 : i32
    %c0_i32_1 = arith.constant 0 : i32
    return %arg0, %c0_i32, %c0_i32_0 : i32, i32, i32
  }
  func.func @transform_5(%arg0: i32) -> (i32, i32, i32) {
    %c0_i32 = arith.constant 0 : i32
    %c0_i32_0 = arith.constant 0 : i32
    %c0_i32_1 = arith.constant 0 : i32
    return %arg0, %c0_i32, %c0_i32_0 : i32, i32, i32
  }
  func.func @transform_6(%arg0: i32) -> (i32, i32, i32) {
    %c0_i32 = arith.constant 0 : i32
    %c0_i32_0 = arith.constant 0 : i32
    %c0_i32_1 = arith.constant 0 : i32
    return %arg0, %c0_i32, %c0_i32_0 : i32, i32, i32
  }
}

</mosaic_0001>

<bundles_post_ra>
// kernel: tpu_custom_call.1
= control target key start
LH: loop header
LB: loop body
LE: loop exit
PB: predicated region body
PF: predicated region fallthrough
CT: control target
= control target key end

     0   :  { %12 = vsyncpa [#allocation4], 0  ;;  %s1641_s0 = inlined_call_operand.vmem [shape: bf16[8,16,4], index: 0, kind: input, shape index: {}]   ;;  %s1642_s1 = inlined_call_operand.vmem [shape: bf16[32,128], index: 1, kind: input, shape index: {}]   ;;  %s1643_s2 = inlined_call_operand.vmem [shape: bf16[4,128], index: 2, kind: input, shape index: {}]   ;;  %s1644_s3 = inlined_call_operand.hbm [shape: f32[8,16,128], index: 3, kind: output, shape index: {0}]   ;;  %s1645_s4 = inlined_call_operand.hbm [shape: f32[8,16,128], index: 4, kind: output, shape index: {1}]   ;;  %s1646_s5 = inlined_call_operand.hbm [shape: f32[4,2,128], index: 5, kind: output, shape index: {2}]   ;;  %s1647_s6 = inlined_call_operand.hbm [shape: f32[4,2,128], index: 6, kind: output, shape index: {3}]  }
   0x1   :  { %14 = vsyncpa [#allocation4 + $0x1], 0 }
   0x2   :  { %15 = vsyncpa [#allocation6], 0 }
   0x3   :  { %17 = vsyncpa [#allocation6 + $0x1], 0 }
   0x4   :  { %18 = vsyncpa [#allocation9], 0 }
   0x5   :  { %20 = vsyncpa [#allocation9 + $0x1], 0  ;;  %s1350_s21 = smov 0   ;;  %s1352_s22 = smov 0  }
   0x6   :  { %s1354_s23 = smov 0   ;;  %s1356_s24 = smov 0  }
   0x7 LB: > { %s1371_s25 = sadd.s32 4294967295, %s1305_s24   ;;  %s1648_s26 = sadd.s32 4294967294, %s1305_s24   ;;  %s1305_s24 = sphi %s1356_s24, %s1673_s24   ;;  %s1301_s23 = sphi %s1354_s23, %s1672_s23   ;;  %s1297_s22 = sphi %s1352_s22, %s1671_s22   ;;  %s1293_s21 = sphi %s1350_s21, %s1670_s21  }
   0x8   : > { %s1375_s27 = sadd.s32 1, %s1305_s24   ;;  %s101_s28 = sadd.s32 1, %s1301_s23 }
   0x9   : > { %s98_s29 = ssub.s32 %s1305_s24, %s1375_s27  ;;  %p111_p0 = scmp.ne.s32.totalorder %s1301_s23, %s1297_s22 }
   0xa   : > { %p99_p1 = scmp.eq.s32.totalorder %s98_s29, 0  ;;  %p112_p2 = scmp.eq.s32.totalorder %s1371_s25, 3 }
   0xb   : > { %p117_p3 = scmp.ne.s32.totalorder %s1297_s22, %s1293_s21  ;;  %p118_p4 = scmp.eq.s32.totalorder %s1648_s26, 3 }
   0xc   : > { %s1388_s30 = scalar_select %p99_p1, %s1301_s23, %s101_s28  }
   0xd   : > { %p1390_p5 = por %p112_p2, %p111_p0  ;;  %p1394_p6 = por %p118_p4, %p117_p3 }
   0xe   : > { %p1031_p7 = scmp.ge.s32.totalorder %s1305_s24, 1  ;;  %p230_p8 = scmp.lt.s32.totalorder %s1305_s24, 5 }
  0x10   : > { %p231_p9 = pnand %p1031_p7, %p230_p8 }
  0x11   : > { %s1401_s9 = sshll.u32 (!%p231_p9), %s1371_s25, 1  ;;  %s1653_s15 = smov (!%p231_p9), 8  }
  0x12   : > { %234 = sbr.rel (%p231_p9) target bundleno = 364 (0x16c), region = 32  ;;  %p277_p10 = scmp.lt.s32.totalorder (!%p231_p9), %s1401_s9, 7 }
  0x13   : > { %s1308_s16 = smov (!%p231_p9), 4   ;;  %s1309_s17 = smov (!%p231_p9), 12  }
  0x14   : > { %s1310_s18 = smov (!%p231_p9), 24   ;;  %s1311_s19 = smov (!%p231_p9), 16  }
  0x15   : > { %s1312_s20 = smov (!%p231_p9), 20   ;;  %s1313_s28 = smov (!%p231_p9), 28  }
  0x16   : > { %s1171_s26 = scalar_lea.hbm (!%p231_p9), %s1645_s4, 128 }
  0x17   : > { %vm290_vm0 = vcmask 25600   ;;  %vm291_vm1 = vsmask.f32 1280  ;;  %v296_v0 = vld [vmem:[#allocation2 + $0xc] sm:$0x3]  ;;  %s278_s10 = scalar_select %p277_p10, %s1401_s9, 7 }
  0x18   : > { %vm1405_vm2 = vmand %vm290_vm0, %vm291_vm1  ;;  %v293_v3 = vld [vmem:[#allocation2] sm:$0x3]  ;;  %vm299_vm3 = vsmask.f32 5392  ;;  %vm345_vm4 = vcmask 27649   ;;  %vm351_vm8 = vcmask 27648  }
  0x19   : > { %v297_v2 = vsel %vm1405_vm2, 0, %v296_v0  ;;  %v294_v4 = vsel %vm1405_vm2, 0, %v293_v3  ;;  %s1073_s11 = sshll.u32 %s278_s10, 3  ;;  %vm346_vm5 = vsmask.f32 7942  ;;  %vm1431_vm7 = vmor %vm291_vm1, %vm299_vm3  ;;  %vm440_vm11 = vcmask 1046528  }
  0x1a   : > { %298 = vst [vmem:[#allocation2 + $0xc] sm:$0x3] %v297_v2  ;;  %s1417_s14 = scalar_lea.vmem %s1641_s0, %s1073_s11  ;;  %vm1425_vm6 = vmand %vm345_vm4, %vm346_vm5  ;;  %v360_v31 = vld [vmem:[#allocation2 + $0x14] sm:$0x3]  ;;  %v353_v37 = vld [vmem:[#allocation2 + $0x8] sm:$0x3] }
  0x1b   : > { %295 = vst [vmem:[#allocation2] sm:$0x3] %v294_v4  ;;  %v288_v5 = vld [vmem:[%s1417_s14 + $0x8] sm:$0xf]  ;;  %v289_v6 = vld [vmem:[%s1417_s14 + $0xc] sm:$0xf] }
  0x1c   : > { %v286_v7 = vld [vmem:[%s1417_s14] sm:$0xf]  ;;  %v321_v8 = vshrl.u32 %v288_v5, 16  ;;  %v324_v9 = vshll.u32 %v288_v5, 16  ;;  %v330_v10 = vshrl.u32 %v289_v6, 16  ;;  %v333_v11 = vshll.u32 %v289_v6, 16 }
  0x1d   : > { %v287_v12 = vld [vmem:[%s1417_s14 + $0x4] sm:$0xf]  ;;  %v302_v13 = vshrl.u32 %v286_v7, 16  ;;  %v305_v14 = vshll.u32 %v286_v7, 16  ;;  %vm363_vm9 = vsmask.f32 3334 }
  0x1e   : > { %v311_v15 = vshrl.u32 %v287_v12, 16  ;;  %v314_v16 = vshll.u32 %v287_v12, 16  ;;  %v323_v17 = vrot.slane %v321_v8, 6  ;;  %v326_v18 = vrot.slane %v324_v9, 7  ;;  %vm1448_vm10 = vmand %vm345_vm4, %vm363_vm9  ;;  %s797_s11 = sand.u32 1, %s1371_s25  }
  0x1f   : > { %v332_v19 = vrot.slane %v330_v10, 6  ;;  %v335_v20 = vrot.slane %v333_v11, 7  ;;  %v304_v23 = vrot.slane %v302_v13, 6  ;;  %v307_v24 = vrot.slane %v305_v14, 7  ;;  %s1548_s13 = scalar_lea.sflag [#allocation6], %s797_s11 }
  0x20   : > { %v313_v25 = vrot.slane %v311_v15, 6  ;;  %v316_v26 = vrot.slane %v314_v16, 7  ;;  %v327_v27 = vor.u32 %v326_v18, %v323_v17  ;;  %vm405_vm12 = vsmask.f32 7424 }
  0x21   : > { %v356_v22 = vld [vmem:[#allocation2 + $0xc] sm:$0xe]  ;;  %v336_v28 = vor.u32 %v335_v20, %v332_v19  ;;  %v308_v32 = vor.u32 %v307_v24, %v304_v23  ;;  %vm457_vm13 = vsmask.f32 6400  ;;  %vm564_vm14 = vcmask 1044480  }
  0x22   : > { %v348_v29 = vld [vmem:[#allocation2] sm:$0xe]  ;;  %v317_v33 = vor.u32 %v316_v26, %v313_v25  ;;  %v328_v34 = vrot.slane %v327_v27, 4  ;;  %v357_v36 = vsel %vm1425_vm6, %v327_v27, %v356_v22  ;;  %vm502_vm15 = vcmask 1045504  }
  0x23   : > { %v338_v35 = vrot.slane %v336_v28, 4  ;;  %358 = vst [vmem:[#allocation2 + $0xc] sm:$0xe] %v357_v36  ;;  %v309_v38 = vrot.slane %v308_v32, 4  ;;  %v349_v40 = vsel %vm1425_vm6, %v308_v32, %v348_v29  ;;  %vm519_vm0 = vsmask.f32 5376 }
  0x24   : > { %v319_v39 = vrot.slane %v317_v33, 4  ;;  %v337_v41 = vsel %vm1431_vm7, %v328_v34, %v336_v28  ;;  %350 = vst [vmem:[#allocation2] sm:$0xe] %v349_v40  ;;  %vm581_vm1 = vsmask.f32 4352  ;;  %vm620_vm3 = vcmask 31744  }
  0x25   : > { %v361_v42 = vsel %vm1405_vm2, %v338_v35, %v360_v31  ;;  %359 = vst.msk [vmem:[#allocation2 + $0x10] sm:$0xf] %vm351_vm8, %v337_v41  ;;  %v318_v43 = vsel %vm1431_vm7, %v309_v38, %v317_v33  ;;  %vm630_vm4 = vcmask 97280   ;;  %vm625_vm5 = vcmask 64512  }
  0x26   : > { %v354_v44 = vsel %vm1405_vm2, %v319_v39, %v353_v37  ;;  %362 = vst [vmem:[#allocation2 + $0x14] sm:$0x3] %v361_v42  ;;  %vm712_vm2 = vcmask 1041408   ;;  %vm635_vm6 = vcmask 130048   ;;  %vm640_vm7 = vcmask 162816  }
  0x27   : > { %352 = vst.msk [vmem:[#allocation2 + $0x4] sm:$0xf] %vm351_vm8, %v318_v43  ;;  %vm645_vm8 = vcmask 195584   ;;  %vm650_vm9 = vcmask 228352  }
  0x28   : > { %355 = vst [vmem:[#allocation2 + $0x8] sm:$0x3] %v354_v44 }
  0x2a   : > { %v378_v45 = vld [vmem:[#allocation2 + $0xc] sm:$0xe] }
  0x2b   : > { %v437_v46 = vunpack.c.l.b16 %v378_v45  ;;  %v386_v52 = vld [vmem:[#allocation2 + $0xc] sm:$0x8]  ;;  %v377_v0 = vld [vmem:[#allocation2] sm:$0xe] }
  0x2c   : > { %v1452_v48 = vld [vmem:[#allocation2 + $0xc] sm:$0xff]   ;;  %v561_v63 = vunpack.c.l.b16 %v386_v52  ;;  %v436_v11 = vunpack.c.l.b16 %v377_v0  ;;  %v381_v16 = vld [vmem:[#allocation2] sm:$0xc] }
  0x2d   : > { %v376_v49 = vld [vmem:[#allocation2 + $0x14] sm:$0x1]  ;;  %v396_v50 = vunpack.c.h.b16 %v1452_v48  ;;  %v368_v51 = vld [vmem:[#allocation2 + $0x14] sm:$0xe]  ;;  %v382_v56 = vld [vmem:[#allocation2 + $0xc] sm:$0xc]  ;;  %v498_v29 = vunpack.c.l.b16 %v381_v16 }
  0x2e   : > { %v402_v53 = vunpack.c.l.b16 %v376_v49  ;;  %v1455_v54 = vld [vmem:[#allocation2] sm:$0xff]   ;;  %v369_v55 = vsel %vm1448_vm10, 0, %v368_v51  ;;  %v421_v3 = vshll.u32 %v1452_v48, 16  ;;  %v499_v4 = vunpack.c.l.b16 %v382_v56 }
  0x2f   : > { %v439_v57 = vpack.c.b16 %v396_v50, %v437_v46  ;;  %v375_v58 = vld [vmem:[#allocation2 + $0x8] sm:$0x1]  ;;  %v409_v59 = vshll.u32 %v1455_v54, 16  ;;  %370 = vst [vmem:[#allocation2 + $0x14] sm:$0xe] %v369_v55  ;;  %v407_v62 = vshrl.u32 %v1455_v54, 16  ;;  %v1465_v17 = vpack.c.b16 %v396_v50, %v561_v63 }
  0x30   : > { %v404_v60 = vpack.c.b16 %v402_v53, %v402_v53  ;;  %v401_v61 = vunpack.c.l.b16 %v375_v58  ;;  %v419_v7 = vshrl.u32 %v1452_v48, 16  ;;  %v423_v9 = vrot.slane %v421_v3, 1  ;;  %v365_v19 = vld [vmem:[#allocation2 + $0x8] sm:$0xe] }
  0x31   : > { %v444_v1 = vrot.slane %v439_v57, 1  ;;  %v411_v2 = vrot.slane %v409_v59, 1  ;;  %v476_v10 = vshrl.u32 %v439_v57, 16  ;;  %v479_v15 = vshll.u32 %v439_v57, 16 }
  0x32   : > { %v445_v5 = vrot.slane %v404_v60, 1  ;;  %v403_v6 = vpack.c.b16 %v401_v61, %v401_v61  ;;  %v426_v8 = vshll.u32 %v404_v60, 16  ;;  %v1467_v18 = vpack.c.b16 %v396_v50, %v499_v4  ;;  %v385_v60 = vld [vmem:[#allocation2] sm:$0x8] }
  0x33   : > { %v412_v13 = vor.u32 %v411_v2, %v407_v62  ;;  %v424_v21 = vor.u32 %v423_v9, %v419_v7  ;;  %v1470_v25 = vunpack.c.h.b16 %v1455_v54  ;;  %v478_v27 = vrot.slane %v476_v10, 1 }
  0x34   : > { %v446_v12 = vsel %vm440_vm11, %v444_v1, %v445_v5  ;;  %v414_v14 = vshll.u32 %v403_v6, 16  ;;  %v428_v22 = vrot.slane %v426_v8, 1  ;;  %v481_v31 = vrot.slane %v479_v15, 2 }
  0x35   : > { %449 = vrot.lane.b32.xlu0 %v446_v12, %s1653_s15  ;;  %v438_v32 = vpack.c.b16 %v1470_v25, %v436_v11  ;;  %v442_v33 = vrot.slane %v403_v6, 1  ;;  %v538_v36 = vshrl.u32 %v1467_v18, 16  ;;  %v366_v37 = vsel %vm1448_vm10, 0, %v365_v19 }
  0x36   : > { %v416_v20 = vrot.slane %v414_v14, 1  ;;  %v380_v23 = vld [vmem:[#allocation2 + $0x14] sm:$0x3]  ;;  %v429_v38 = vsel %vm405_vm12, %v424_v21, %v428_v22  ;;  %v568_v39 = vrot.slane %v1465_v17, 3  ;;  %v541_v40 = vshll.u32 %v1467_v18, 16 }
  0x37   : > { %v384_v24 = vld [vmem:[#allocation2 + $0x14] sm:$0x7]  ;;  %v454_v26 = vunpack.c.l.b16 %v380_v23  ;;  %v441_v41 = vrot.slane %v438_v32, 1  ;;  %367 = vst [vmem:[#allocation2 + $0x8] sm:$0xe] %v366_v37  ;;  %v1481_v45 = vpack.c.b16 %v1470_v25, %v498_v29  ;;  %v459_v50 = vshrl.u32 %v438_v32, 16 }
  0x38   : > { %v516_v28 = vunpack.c.l.b16 %v384_v24  ;;  %v417_v30 = vsel %vm405_vm12, %v412_v13, %v416_v20  ;;  %v462_v47 = vshll.u32 %v438_v32, 16  ;;  %v482_v51 = vor.u32 %v481_v31, %v478_v27  ;;  %v388_v4 = vld [vmem:[#allocation2 + $0x14] sm:$0xf] }
  0x39   : > { %430 = vrot.lane.b32.xlu1 %v417_v30, %s1308_s16  ;;  %v456_v34 = vpack.c.b16 %v454_v26, %v454_v26  ;;  %v443_v49 = vsel %vm440_vm11, %v441_v41, %v442_v33  ;;  %v540_v55 = vrot.slane %v538_v36, 2  ;;  %v543_v57 = vrot.slane %v541_v40, 3 }
  0x3a   : > { %v518_v35 = vpack.c.b16 %v516_v28, %v516_v28  ;;  %447 = vrot.lane.b32.xlu2 %v443_v49, %s1653_s15  ;;  %v506_v62 = vrot.slane %v1467_v18, 2  ;;  %v461_v0 = vrot.slane %v459_v50, 1  ;;  %v464_v1 = vrot.slane %v462_v47, 2 }
  0x3b   : > { %v484_v42 = vshrl.u32 %v456_v34, 16  ;;  %v487_v43 = vshll.u32 %v456_v34, 16  ;;  %v507_v63 = vrot.slane %v456_v34, 2  ;;  %v521_v2 = vshrl.u32 %v1481_v45, 16 }
  0x3c   : > { %v546_v44 = vshrl.u32 %v518_v35, 16  ;;  %v549_v46 = vshll.u32 %v518_v35, 16  ;;  %v569_v56 = vrot.slane %v518_v35, 3  ;;  %v524_v3 = vshll.u32 %v1481_v45, 16 }
  0x3d   : > { %432 = vrot.lane.b32.xlu0 %v429_v38, %s1308_s16  ;;  %v486_v52 = vrot.slane %v484_v42, 1  ;;  %v489_v53 = vrot.slane %v487_v43, 2  ;;  %v560_v8 = vunpack.c.l.b16 %v385_v60  ;;  %v508_v13 = vsel %vm502_vm15, %v506_v62, %v507_v63 }
  0x3e   : > { %v548_v58 = vrot.slane %v546_v44, 2  ;;  %v551_v59 = vrot.slane %v549_v46, 3  ;;  %v379_v6 = vld [vmem:[#allocation2 + $0x8] sm:$0x3]  ;;  %v570_v10 = vsel %vm564_vm14, %v568_v39, %v569_v56  ;;  %v544_v14 = vor.u32 %v543_v57, %v540_v55 }
  0x3f   : > { %v490_v61 = vor.u32 %v489_v53, %v486_v52  ;;  %v383_v7 = vld [vmem:[#allocation2 + $0x8] sm:$0x7]  ;;  %v453_v11 = vunpack.c.l.b16 %v379_v6  ;;  %v578_v18 = vunpack.c.l.b16 %v388_v4  ;;  %v465_v20 = vor.u32 %v464_v1, %v461_v0 }
  0x40   : > { %v387_v9 = vld [vmem:[#allocation2 + $0x8] sm:$0xf]  ;;  %v515_v12 = vunpack.c.l.b16 %v383_v7  ;;  %v552_v15 = vor.u32 %v551_v59, %v548_v58  ;;  %v523_v22 = vrot.slane %v521_v2, 2  ;;  %v526_v23 = vrot.slane %v524_v3, 3  ;;  %v695_v7 = vld [vmem:[%s1643_s2] sm:$0x3] }
  0x41   : > { %v491_v5 = vsel %vm457_vm13, %v482_v51, %v490_v61  ;;  %v577_v16 = vunpack.c.l.b16 %v387_v9  ;;  %v455_v19 = vpack.c.b16 %v453_v11, %v453_v11  ;;  %v562_v24 = vpack.c.b16 %v1470_v25, %v560_v8  ;;  %v1077_v6 = vld [vmem:[%s1642_s1 + $0x8] sm:$0xff]  ;;  %v1074_v11 = vld [vmem:[%s1417_s14] sm:$0xff] }
  0x42   : > { %494 = vrot.lane.b32.xlu1 %v491_v5, %s1309_s17  ;;  %v517_v21 = vpack.c.b16 %v515_v12, %v515_v12  ;;  %511 = vrot.lane.b32.xlu2 %v508_v13, %s1311_s19  ;;  %v553_v31 = vsel %vm519_vm0, %v544_v14, %v552_v15  ;;  %v503_v32 = vrot.slane %v1481_v45, 2  ;;  %v580_v33 = vpack.c.b16 %v578_v18, %v578_v18  ;;  %v1075_v9 = vld [vmem:[%s1417_s14 + $0x8] sm:$0xff]  ;;  %s1536_s14 = sand.u32 1, %s1297_s22  }
  0x43   : > { %v579_v26 = vpack.c.b16 %v577_v16, %v577_v16  ;;  %v467_v27 = vshrl.u32 %v455_v19, 16  ;;  %v470_v28 = vshll.u32 %v455_v19, 16  ;;  %v600_v34 = vshrl.u32 %v1465_v17, 16  ;;  %1086 = vmatpush.bf16.msra.mxu2 %v1077_v6  ;;  %682 = vmatpush.bf16.msra.mxu0 %v1077_v6 }
  0x44   : > { %v529_v29 = vshrl.u32 %v517_v21, 16  ;;  %v532_v30 = vshll.u32 %v517_v21, 16  ;;  %v527_v39 = vor.u32 %v526_v23, %v523_v22  ;;  %v583_v40 = vshrl.u32 %v562_v24, 16 }
  0x45   : > { %573 = vrot.lane.b32.xlu0 %v570_v10, %s1310_s18  ;;  %v469_v35 = vrot.slane %v467_v27, 1  ;;  %v472_v36 = vrot.slane %v470_v28, 2  ;;  %v586_v41 = vshll.u32 %v562_v24, 16  ;;  %v591_v25 = vshrl.u32 %v579_v26, 16  ;;  %v1076_v10 = vld [vmem:[%s1642_s1] sm:$0xff] }
  0x46   : > { %v531_v37 = vrot.slane %v529_v29, 2  ;;  %v534_v38 = vrot.slane %v532_v30, 3  ;;  %v594_v44 = vshll.u32 %v579_v26, 16  ;;  %v504_v46 = vrot.slane %v455_v19, 2 }
  0x47   : > { %v473_v42 = vor.u32 %v472_v36, %v469_v35  ;;  %v602_v49 = vrot.slane %v600_v34, 3  ;;  %v603_v45 = vshll.u32 %v1465_v17, 16  ;;  %v608_v50 = vshrl.u32 %v580_v33, 16  ;;  %1087 = vmatpush.bf16.msra.mxu2 %v1076_v10  ;;  %683 = vmatpush.bf16.msra.mxu0 %v1076_v10 }
  0x48   : > { %v535_v43 = vor.u32 %v534_v38, %v531_v37  ;;  %v611_v47 = vshll.u32 %v580_v33, 16  ;;  %v505_v52 = vsel %vm502_vm15, %v503_v32, %v504_v46  ;;  %v565_v53 = vrot.slane %v562_v24, 3 }
  0x49   : > { %v474_v51 = vsel %vm457_vm13, %v465_v20, %v473_v42  ;;  %v605_v55 = vrot.slane %v603_v45, 4  ;;  %v610_v56 = vrot.slane %v608_v50, 3  ;;  %v566_v58 = vrot.slane %v517_v21, 3 }
  0x4a   : > { %556 = vrot.lane.b32.xlu1 %v553_v31, %s1312_s20  ;;  %509 = vrot.lane.b32.xlu2 %v505_v52, %s1311_s19  ;;  %v613_v57 = vrot.slane %v611_v47, 4  ;;  %v585_v59 = vrot.slane %v583_v40, 3  ;;  %v588_v60 = vrot.slane %v586_v41, 4  ;;  %v593_v61 = vrot.slane %v591_v25, 3  ;;  %s1649_s19 = sshll.u32 %s1371_s25, 5 }
  0x4b   : > { %v536_v17 = vsel %vm519_vm0, %v527_v39, %v535_v43  ;;  %v596_v62 = vrot.slane %v594_v44, 4  ;;  %v606_v63 = vor.u32 %v605_v55, %v602_v49  ;;  %v567_v1 = vsel %vm564_vm14, %v565_v53, %v566_v58  ;;  %s838_s29 = scalar_lea.hbm %s1645_s4, %s1649_s19 }
  0x4c   : > { %v614_v0 = vor.u32 %v613_v57, %v610_v56  ;;  %v589_v3 = vor.u32 %v588_v60, %v585_v59  ;;  %v714_v8 = vsel %vm712_vm2, %v695_v7, 0  ;;  %vm671_vm10 = vcmask 261120   ;;  %s841_s12 = sshll.u32 %s838_s29, 4  ;;  %s842_s12 = int_to_ptr.hbm [resolvable:$true] %s841_s12 }
  0x4d   : > { %492 = vrot.lane.b32.xlu0 %v474_v51, %s1309_s17  ;;  %v597_v4 = vor.u32 %v596_v62, %v593_v61  ;;  %1088 = vmatpush.bf16.msra.mxu3 %v714_v8  ;;  %s1650_s17 = sshll.u32 %s1536_s14, 5  ;;  %s1165_s16 = sshra.s32 %s842_s12, 4  ;;  %s1166_s16 = int_to_ptr.hbm [resolvable:$true] %s1165_s16 }
  0x4e   : > { %v615_v2 = vsel %vm581_vm1, %v606_v63, %v614_v0  ;;  %723 = vmatpush.bf16.msra.mxu1 %v714_v8  ;;  %p1172_p0 = scmp.lt.s32.totalorder %s1166_s16, %s1645_s4 }
  0x4f   : > { %v598_v5 = vsel %vm581_vm1, %v589_v3, %v597_v4 }
  0x50   : > { %1058 = vmatmul.msk.bf16.vlgmr.msra.gmra.mxu3 %vm620_vm3, %v1075_v9 }
  0x51   : > { %1057 = vmatmul.msk.bf16.vlgmr.msra.gmra.mxu1 %vm620_vm3, %v1074_v11 }
  0x52   : > { %554 = vrot.lane.b32.xlu1 %v536_v17, %s1312_s20  ;;  %618 = vrot.lane.b32.xlu2 %v615_v2, %s1313_s28  ;;  %s1167_s20 = scalar_lea.hbm %s1166_s16, 32 }
  0x53   : > { %p1168_p11 = scmp.ne.s32.totalorder %s1166_s16, %s1167_s20  ;;  %p1173_p1 = scmp.lt.s32.totalorder %s1171_s26, %s1167_s20 }
  0x55   : > { %571 = vrot.lane.b32.xlu0 %v567_v1, %s1310_s18  ;;  %s261_s18 = scalar_lea.vmem [#allocation5], %s1650_s17  ;;  %p1169_p12 = pnand %p1168_p11, %p1390_p5 }
  0x56   : > { %s839_s10 = sshll.u32 %s261_s18, 4  ;;  %p1174_p2 = por %p1173_p1, %p1172_p0  ;;  %s840_s10 = int_to_ptr.vmem [resolvable:$true] %s839_s10 }
  0x57   : > { %p1170_p13 = pneg %p1169_p12 }
  0x59   : > { %p1175_p3 = pnand %p1174_p2, %p1170_p13 }
  0x5a   : > { %616 = vrot.lane.b32.xlu1 %v598_v5, %s1313_s28 }
  0x94   : > { %v448_v12 = vpop.permute.xlu2 %447 }
  0x9c   : > { %v512_v14 = vpop.permute.xlu2 %511 }
  0xa4   : > { %v510_v18 = vpop.permute.xlu2 %509 }
  0xa7   : > { %v450_v13 = vpop.permute.xlu0 %449 }
  0xab   : > { %v431_v15 = vpop.permute.xlu1 %430 }
  0xac   : > { %v619_v27 = vpop.permute.xlu2 %618  ;;  %v622_v31 = vsel %vm620_vm3, %v1455_v54, %v431_v15 }
  0xad   : > { %v627_v33 = vsel %vm625_vm5, %v622_v31, %v448_v12 }
  0xaf   : > { %v433_v16 = vpop.permute.xlu0 %432 }
  0xb0   : > { %v624_v20 = vsel %vm620_vm3, %v1452_v48, %v433_v16 }
  0xb1   : > { %v629_v22 = vsel %vm625_vm5, %v624_v20, %v450_v13 }
  0xb4   : > { %v495_v19 = vpop.permute.xlu1 %494 }
  0xb5   : > { %v634_v23 = vsel %vm630_vm4, %v629_v22, %v495_v19 }
  0xb6   : > { %v639_v26 = vsel %vm635_vm6, %v634_v23, %v512_v14 }
  0xb7   : > { %v574_v21 = vpop.permute.xlu0 %573 }
  0xbc   : > { %v557_v24 = vpop.permute.xlu1 %556 }
  0xbd   : > { %v644_v28 = vsel %vm640_vm7, %v639_v26, %v557_v24 }
  0xbe   : > { %v649_v48 = vsel %vm645_vm8, %v644_v28, %v574_v21 }
  0xbf   : > { %v493_v29 = vpop.permute.xlu0 %492  ;;  %v654_v30 = vsel %vm650_vm9, %v649_v48, %v619_v27 }
  0xc0   : > { %1048 = vmatmul.msk.bf16.vlgmr.msra.gmra.mxu2 %vm671_vm10, %v654_v30  ;;  %v632_v34 = vsel %vm630_vm4, %v627_v33, %v493_v29 }
  0xc1   : > { %v637_v36 = vsel %vm635_vm6, %v632_v34, %v510_v18 }
  0xc4   : > { %v555_v32 = vpop.permute.xlu1 %554 }
  0xc5   : > { %v642_v37 = vsel %vm640_vm7, %v637_v36, %v555_v32 }
  0xc7   : > { %v572_v35 = vpop.permute.xlu0 %571 }
  0xc8   : > { %v647_v38 = vsel %vm645_vm8, %v642_v37, %v572_v35 }
  0xcc   : > { %v617_v39 = vpop.permute.xlu1 %616 }
  0xcd   : > { %v652_v40 = vsel %vm650_vm9, %v647_v38, %v617_v39 }
  0xce   : > { %1047 = vmatmul.msk.bf16.vlgmr.msra.gmra.mxu0 %vm671_vm10, %v652_v40  ;;  %v725_v54 = vpop.f32.mrf.mxu1 }
  0xcf   : > { %739 = vst [vmem:[%s261_s18] sm:$0xff] %v725_v54  ;;  %v777_v25 = vmul.f32 %v725_v54, %v725_v54 }
  0xd3   : > { %v730_v41 = vpop.f32.mrf.mxu3 }
  0xd4   : > { %741 = vst [vmem:[%s261_s18 + $0x10] sm:$0xff] %v730_v41  ;;  %v779_v43 = vmul.f32 %v730_v41, %v730_v41 }
  0xd6   : > { %v727_v42 = vpop.f32.mrf.mxu1 }
  0xd7   : > { %740 = vst [vmem:[%s261_s18 + $0x8] sm:$0xff] %v727_v42  ;;  %v768_v44 = vadd.f32 %v727_v42, %v725_v54  ;;  %v778_v46 = vmul.f32 %v727_v42, %v727_v42 }
  0xd9   : > { %v781_v49 = vadd.f32 %v778_v46, %v777_v25  ;;  %v769_v45 = vadd.f32 %v768_v44, %v730_v41 }
  0xdb   : > { %v732_v50 = vpop.f32.mrf.mxu3  ;;  %v782_v52 = vadd.f32 %v781_v49, %v779_v43 }
  0xdc   : > { %742 = vst [vmem:[%s261_s18 + $0x18] sm:$0xff] %v732_v50  ;;  %v770_v47 = vadd.f32 %v769_v45, %v732_v50  ;;  %v780_v51 = vmul.f32 %v732_v50, %v732_v50 }
  0xdd   : > { %1178 = shalt.err (!%p1175_p3)
}
  0xde   : > { %s1652_s18 = smov 128   ;;  %v771_v53 = vrot.slane %v770_v47, 4  ;;  %v783_v55 = vadd.f32 %v782_v52, %v780_v51  ;;  %s1651_s26 = sshll.u32 %s1536_s14, 1  ;;  %vm765_vm11 = vcmask 1040384  }
  0xdf   : > { %1090 = dma.vmem_to_hbm [thread:$0]  (%p1390_p5), %s840_s10, 512, %s842_s12, %s1548_s13, %s1652_s18, %s1652_s18, %s1653_s15  }
  0xe0   : > { %v772_v56 = vadd.f32 %v771_v53, %v770_v47  ;;  %v784_v57 = vrot.slane %v783_v55, 4  ;;  %s868_s11 = scalar_lea.hbm %s1647_s6, %s1401_s9  ;;  %s275_s10 = scalar_lea.vmem [#allocation8], %s1651_s26 }
  0xe1   : > { %s870_s12 = sshll.u32 %s275_s10, 4  ;;  %s872_s16 = sshll.u32 %s868_s11, 4  ;;  %s871_s12 = int_to_ptr.vmem [resolvable:$true] %s870_s12  ;;  %s873_s16 = int_to_ptr.hbm [resolvable:$true] %s872_s16 }
  0xe2   : > { %v773_v58 = vrot.slane %v772_v56, 2  ;;  %v785_v59 = vadd.f32 %v784_v57, %v783_v55  ;;  %s808_s20 = scalar_lea.sflag [#allocation9], %s1536_s14  ;;  %s1193_s28 = sshra.s32 %s873_s16, 4  ;;  %s1194_s28 = int_to_ptr.hbm [resolvable:$true] %s1193_s28 }
  0xe3   : > { %s1195_s29 = scalar_lea.hbm %s1194_s28, 2  ;;  %s1199_s26 = scalar_lea.hbm %s1647_s6, 8 }
  0xe4   : > { %v774_v60 = vadd.f32 %v773_v58, %v772_v56  ;;  %v786_v61 = vrot.slane %v785_v59, 2  ;;  %p1196_p4 = scmp.ne.s32.totalorder %s1194_s28, %s1195_s29  ;;  %p1200_p9 = scmp.lt.s32.totalorder %s1194_s28, %s1647_s6 }
  0xe5   : > { %p1201_p10 = scmp.lt.s32.totalorder %s1199_s26, %s1195_s29 }
  0xe6   : > { %v775_v17 = vrot.slane %v774_v60, 1  ;;  %v787_v62 = vadd.f32 %v786_v61, %v785_v59  ;;  %p1197_p7 = pnand %p1196_p4, %p1390_p5 }
  0xe7   : > { %p1202_p11 = por %p1201_p10, %p1200_p9 }
  0xe8   : > { %v788_v63 = vrot.slane %v787_v62, 1  ;;  %v776_v0 = vadd.f32 %v775_v17, %v774_v60  ;;  %p1198_p8 = pneg %p1197_p7 }
  0xea   : > { %v789_v1 = vadd.f32 %v788_v63, %v787_v62  ;;  %p1203_p12 = pnand %p1202_p11, %p1198_p8 }
  0xec   : > { %v790_v2 = vsel %vm765_vm11, %v776_v0, %v789_v1 }
  0xed   : > { %791 = vst [vmem:[%s275_s10] sm:$0x3] %v790_v2 }
  0xee   : > { %1206 = shalt.err (!%p1203_p12)
}
  0xef   : > { %1092 = dma.vmem_to_hbm [thread:$0]  (%p1390_p5), %s871_s12, 32, %s873_s16, %s808_s20  }
  0xf0   : > { %s1664_s10 = sshll.u32 %s1536_s14, 5  ;;  %s1665_s17 = sshll.u32 %s1371_s25, 5 }
  0xf1   : > { %s254_s15 = scalar_lea.vmem [#allocation3], %s1664_s10  ;;  %s820_s26 = scalar_lea.hbm %s1644_s3, %s1665_s17 }
  0xf2   : > { %s821_s29 = sshll.u32 %s254_s15, 4  ;;  %s823_s19 = sshll.u32 %s820_s26, 4  ;;  %s822_s29 = int_to_ptr.vmem [resolvable:$true] %s821_s29  ;;  %s824_s19 = int_to_ptr.hbm [resolvable:$true] %s823_s19 }
  0xf3   : > { %s793_s12 = scalar_lea.sflag [#allocation4], %s1536_s14  ;;  %s1221_s16 = sshra.s32 %s824_s19, 4  ;;  %s1222_s16 = int_to_ptr.hbm [resolvable:$true] %s1221_s16 }
  0xf4   : > { %s1223_s20 = scalar_lea.hbm %s1222_s16, 32  ;;  %s1227_s10 = scalar_lea.hbm %s1644_s3, 128 }
  0xf5   : > { %p1224_p13 = scmp.ne.s32.totalorder %s1222_s16, %s1223_s20  ;;  %p1228_p2 = scmp.lt.s32.totalorder %s1222_s16, %s1644_s3 }
  0xf6   : > { %p1229_p3 = scmp.lt.s32.totalorder %s1227_s10, %s1223_s20 }
  0xf7   : > { %p1225_p0 = pnand %p1224_p13, %p1390_p5 }
  0xf8   : > { %p1230_p4 = por %p1229_p3, %p1228_p2 }
  0xf9   : > { %p1226_p1 = pneg %p1225_p0 }
  0xfb   : > { %p1231_p7 = pnand %p1230_p4, %p1226_p1 }
 0x143   : > { %v690_v3 = vpop.f32.mrf.mxu2 }
 0x144   : > { %737 = vst [vmem:[%s254_s15 + $0x10] sm:$0xff] %v690_v3 }
 0x14b   : > { %v685_v4 = vpop.f32.mrf.mxu0  ;;  %v692_v5 = vpop.f32.mrf.mxu2 }
 0x14c   : > { %735 = vst [vmem:[%s254_s15] sm:$0xff] %v685_v4  ;;  %v752_v7 = vmul.f32 %v685_v4, %v685_v4 }
 0x14d   : > { %738 = vst [vmem:[%s254_s15 + $0x18] sm:$0xff] %v692_v5 }
 0x153   : > { %v687_v6 = vpop.f32.mrf.mxu0 }
 0x154   : > { %736 = vst [vmem:[%s254_s15 + $0x8] sm:$0xff] %v687_v6  ;;  %v743_v8 = vadd.f32 %v687_v6, %v685_v4  ;;  %v753_v9 = vmul.f32 %v687_v6, %v687_v6 }
 0x155   : > { %1234 = shalt.err (!%p1231_p7)
}
 0x156   : > { %s1666_s15 = smov 8   ;;  %s1667_s28 = smov 128   ;;  %v754_v10 = vmul.f32 %v690_v3, %v690_v3  ;;  %v744_v11 = vadd.f32 %v743_v8, %v690_v3  ;;  %v756_v12 = vadd.f32 %v753_v9, %v752_v7  ;;  %v755_v13 = vmul.f32 %v692_v5, %v692_v5 }
 0x157   : > { %1089 = dma.vmem_to_hbm [thread:$0]  (%p1390_p5), %s822_s29, 512, %s824_s19, %s793_s12, %s1667_s28, %s1667_s28, %s1666_s15  }
 0x158   : > { %v745_v14 = vadd.f32 %v744_v11, %v692_v5  ;;  %v757_v15 = vadd.f32 %v756_v12, %v754_v10  ;;  %s854_s20 = scalar_lea.hbm %s1646_s5, %s1401_s9  ;;  %s1668_s29 = sshll.u32 %s1536_s14, 1 }
 0x159   : > { %s268_s19 = scalar_lea.vmem [#allocation7], %s1668_s29  ;;  %s858_s25 = sshll.u32 %s854_s20, 4  ;;  %s859_s25 = int_to_ptr.hbm [resolvable:$true] %s858_s25 }
 0x15a   : > { %v746_v16 = vrot.slane %v745_v14, 4  ;;  %v758_v18 = vadd.f32 %v757_v15, %v755_v13  ;;  %s856_s12 = sshll.u32 %s268_s19, 4  ;;  %s1249_s11 = sshra.s32 %s859_s25, 4  ;;  %s857_s12 = int_to_ptr.vmem [resolvable:$true] %s856_s12  ;;  %s1250_s11 = int_to_ptr.hbm [resolvable:$true] %s1249_s11 }
 0x15b   : > { %s1251_s10 = scalar_lea.hbm %s1250_s11, 2  ;;  %s1255_s14 = scalar_lea.hbm %s1646_s5, 8 }
 0x15c   : > { %v747_v19 = vadd.f32 %v746_v16, %v745_v14  ;;  %v759_v20 = vrot.slane %v758_v18, 4  ;;  %p1252_p8 = scmp.ne.s32.totalorder %s1250_s11, %s1251_s10  ;;  %p1256_p11 = scmp.lt.s32.totalorder %s1250_s11, %s1646_s5 }
 0x15d   : > { %p1257_p12 = scmp.lt.s32.totalorder %s1255_s14, %s1251_s10 }
 0x15e   : > { %v748_v21 = vrot.slane %v747_v19, 2  ;;  %v760_v22 = vadd.f32 %v759_v20, %v758_v18  ;;  %p1253_p9 = pnand %p1252_p8, %p1390_p5 }
 0x15f   : > { %p1258_p13 = por %p1257_p12, %p1256_p11 }
 0x160   : > { %v749_v23 = vadd.f32 %v748_v21, %v747_v19  ;;  %v761_v24 = vrot.slane %v760_v22, 2  ;;  %p1254_p10 = pneg %p1253_p9 }
 0x162   : > { %v750_v26 = vrot.slane %v749_v23, 1  ;;  %v762_v27 = vadd.f32 %v761_v24, %v760_v22  ;;  %p1259_p0 = pnand %p1258_p13, %p1254_p10 }
 0x164   : > { %v763_v28 = vrot.slane %v762_v27, 1  ;;  %v751_v48 = vadd.f32 %v750_v26, %v749_v23 }
 0x166   : > { %v764_v29 = vadd.f32 %v763_v28, %v762_v27 }
 0x168   : > { %v766_v30 = vsel %vm765_vm11, %v751_v48, %v764_v29 }
 0x169   : > { %767 = vst [vmem:[%s268_s19] sm:$0x3] %v766_v30 }
 0x16a   : > { %1262 = shalt.err (!%p1259_p0)
}
 0x16b   : > { %1091 = dma.vmem_to_hbm [thread:$0]  (%p1390_p5), %s857_s12, 32, %s859_s25, %s1548_s13  }
 0x16c PF: > { %p1110_p1 = scmp.ge.s32.totalorder %s1305_s24, 2  ;;  %s884_s28 = sand.u32 1, %s1293_s21  }
 0x16d   : > { %s885_s26 = scalar_lea.sflag [#allocation4], %s884_s28 }
 0x16e   : > { %p1098_p2 = pnand %p1110_p1, %p1394_p6 }
 0x170   : > { %p1099_p3 = pneg %p1098_p2 }
 0x172   : > { %1280 = dma.done.wait (%p1099_p3), %s885_s26, 512  }
 0x173   : > { %1282 = vsyncadd (%p1099_p3), %s885_s26, 4294966784  ;;  %s1669_s16 = sadd.s32 4294967294, %s1305_s24  }
 0x174   : > { %s894_s20 = sand.u32 1, %s1669_s16  }
 0x175   : > { %s895_s29 = scalar_lea.sflag [#allocation6], %s894_s20 }
 0x176   : > { %1284 = dma.done.wait (%p1099_p3), %s895_s29, 544  }
 0x177   : > { %1286 = vsyncadd (%p1099_p3), %s895_s29, 4294966752  ;;  %s915_s7 = scalar_lea.sflag [#allocation9], %s884_s28 }
 0x178   : > { %1288 = dma.done.wait (%p1099_p3), %s915_s7, 32  }
 0x179   : > { %1290 = vsyncadd (%p1099_p3), %s915_s7, 4294967264  ;;  %p23_p5 = scmp.ge.s32.totalorder %s1375_s27, 6   ;;  %s1670_s21 = smov %s1297_s22 }
 0x17a   : > { %s1671_s22 = smov %s1301_s23  ;;  %s1672_s23 = smov %s1388_s30 }
 0x17b   : > { %s1673_s24 = smov %s1375_s27  ;;  %25 = sbr.rel (!%p23_p5) target bundleno = 7 (0x7), region = 116 }
 0x180   :  { %921 = vsyncpa [#allocation4], 1 }
 0x181   :  { %923 = vsyncpa [#allocation4 + $0x1], 1 }
 0x182   :  { %924 = vsyncpa [#allocation6], 1 }
 0x183   :  { %926 = vsyncpa [#allocation6 + $0x1], 1 }
 0x184   :  { %927 = vsyncpa [#allocation9], 1 }
 0x185   :  { %929 = vsyncpa [#allocation9 + $0x1], 1 }

</bundles_post_ra>
